<compile_context>
chip_gen: v7x
topology: tpu7x:2x2x1
jax: 0.10.0
libtpu: 0.0.40
codegen_flags: <defaults>
</compile_context>

<pallas_src>
import jax
import jax.numpy as jnp
from jax.experimental import pallas as pl
from jax.experimental.pallas import tpu as pltpu


def _pos_bcast_kernel(w_ref, o_ref):
    # w_ref: (tR, lane_w) tile of the flattened positional-embedding slab.
    # o_ref: (Bt, tR, lane_w) output tile.
    # One full-lane, full-sublane vld of the table tile, broadcast over the
    # batch sub-block, stored with unmasked vst; fully hidden under the
    # output DMA.
    o_ref[...] = jnp.broadcast_to(w_ref[...], o_ref.shape)


def _choose_layout(flat):
    """Factor `flat` into (rows, lane_w, flat_pad) with lane_w % 128 == 0.

    Prefers an exact factorization (no padding); otherwise pads flat up to a
    multiple of 1024 and uses lane_w = 1024.
    """
    for lane_w in (2048, 1024, 512, 384, 256, 128):
        if flat % lane_w == 0:
            return flat // lane_w, lane_w, flat
    lane_w = 1024
    flat_pad = pl.cdiv(flat, lane_w) * lane_w
    return flat_pad // lane_w, lane_w, flat_pad


def _pick_tiles(batch, rows, lane_w, itemsize, target_out_bytes=8 * 1024 * 1024):
    """Pick (Bt, tR): batch sub-block and row tile.

    Sized so the whole (Bt, tR, lane_w) output block is ~target_out_bytes.
    tR is a multiple of 8 (sublane-dense) unless the full row extent is
    smaller, in which case the (always-legal) full extent is used.
    """
    bt = min(batch, 8)
    row_bytes = lane_w * itemsize
    tr = max(8, (target_out_bytes // (bt * row_bytes)) // 8 * 8)
    if tr >= rows:
        tr = rows
    return bt, tr


def learned_positional_encoding(x, weight):
    """x: (B, S, ...) array (values unused); weight: (max_len, d_model)."""
    batch_size, seq_len = x.shape[0], x.shape[1]
    max_len, d_model = weight.shape
    assert seq_len <= max_len, "seq_len must not exceed max_len"

    itemsize = jnp.dtype(weight.dtype).itemsize
    flat = seq_len * d_model
    rows, lane_w, flat_pad = _choose_layout(flat)

    # Wrapper-side layout plumbing on the (small) table: slice the rows we
    # need, flatten row-major, pad (rarely), and present as a dense
    # (rows, lane_w) slab so the kernel sees full 128-lane / 8-sublane tiles.
    w_1d = weight[:seq_len].reshape(flat)
    if flat_pad != flat:
        w_1d = jnp.pad(w_1d, (0, flat_pad - flat))
    w_slab = w_1d.reshape(rows, lane_w)

    bt, tr = _pick_tiles(batch_size, rows, lane_w, itemsize)
    grid = (pl.cdiv(rows, tr), pl.cdiv(batch_size, bt))

    out = pl.pallas_call(
        _pos_bcast_kernel,
        out_shape=jax.ShapeDtypeStruct((batch_size, rows, lane_w), weight.dtype),
        grid_spec=pltpu.PrefetchScalarGridSpec(
            num_scalar_prefetch=0,
            # Row-tile axis slow, batch-tile axis fast: the input block index
            # is unchanged across consecutive batch steps, so each table tile
            # is fetched from HBM once per row tile.
            grid=grid,
            in_specs=[
                pl.BlockSpec((tr, lane_w), lambda r, b: (r, 0)),
            ],
            out_specs=pl.BlockSpec((bt, tr, lane_w), lambda r, b: (b, r, 0)),
        ),
        compiler_params=pltpu.CompilerParams(
            dimension_semantics=("parallel", "parallel"),
            vmem_limit_bytes=48 * 1024 * 1024,
        ),
        cost_estimate=pl.CostEstimate(
            flops=0,
            transcendentals=0,
            bytes_accessed=(rows * lane_w + batch_size * rows * lane_w) * itemsize,
        ),
    )(w_slab)

    if flat_pad != flat:
        # Padding was needed: strip the pad columns (one extra XLA copy).
        out = out.reshape(batch_size, flat_pad)[:, :flat]
        return out.reshape(batch_size, seq_len, d_model)
    # Exact factorization: free row-major reinterpretation back to (B, S, D).
    return out.reshape(batch_size, seq_len, d_model)


if __name__ == "__main__":
    key = jax.random.PRNGKey(0)
    k_w, k_x = jax.random.split(key)

    # Module hyperparameters (small, consistent with the forward pass).
    max_len = 16
    d_model = 32
    batch_size = 2
    seq_len = 8

    # nn.init.normal_(weight, mean=0, std=d_model ** -0.5), deterministic.
    weight = (d_model ** -0.5) * jax.random.normal(
        k_w, (max_len, d_model), dtype=jnp.float32
    )

    # Input x: only shape (batch, seq) matters; values are ignored by forward.
    x = jax.random.normal(k_x, (batch_size, seq_len, d_model), dtype=jnp.float32)

    out = learned_positional_encoding(x, weight)
    out = jax.block_until_ready(out)

    # Reference: embedding lookup of arange(seq_len) broadcast over batch.
    ref = jnp.broadcast_to(weight[:seq_len], (batch_size, seq_len, d_model))
    assert out.shape == (batch_size, seq_len, d_model)
    assert jnp.allclose(out, ref), "mismatch vs reference"

    print("KERNEL_OK")
</pallas_src>

<mosaic_0001>
module attributes {stable_mosaic.version = 11 : i64} {
  func.func @_pos_bcast_kernel(%arg0: i32, %arg1: i32, %arg2: memref<1x256xf32, #tpu.memory_space<vmem>>, %arg3: memref<2x1x256xf32, #tpu.memory_space<vmem>>) attributes {dimension_semantics = [#tpu.dimension_semantics<parallel>, #tpu.dimension_semantics<parallel>], iteration_bounds = array<i64: 1, 1>, scalar_prefetch = 0 : i64, scratch_operands = 0 : i64, tpu.core_type = #tpu.core_type<tc>, window_params = [{transform_indices = @transform_0, window_bounds = array<i64: 1, 256>}, {transform_indices = @transform_1, window_bounds = array<i64: 2, 1, 256>}]} {
    %c0 = arith.constant 0 : index
    %c0_0 = arith.constant 0 : index
    %0 = vector.load %arg2[%c0, %c0_0] : memref<1x256xf32, #tpu.memory_space<vmem>>, vector<1x256xf32>
    %1 = vector.shape_cast %0 : vector<1x256xf32> to vector<1x1x256xf32>
    %2 = vector.broadcast %1 : vector<1x1x256xf32> to vector<2x1x256xf32>
    %c0_1 = arith.constant 0 : index
    %c0_2 = arith.constant 0 : index
    %c0_3 = arith.constant 0 : index
    %3 = vector.load %arg3[%c0_1, %c0_2, %c0_3] : memref<2x1x256xf32, #tpu.memory_space<vmem>>, vector<2x1x256xf32>
    tpu.vector_store %arg3[%c0_1, %c0_2, %c0_3], %2 {strides = array<i32>} : memref<2x1x256xf32, #tpu.memory_space<vmem>>, vector<2x1x256xf32>,
    return
  }
  func.func @transform_0(%arg0: i32, %arg1: i32) -> (i32, i32) {
    %c0_i32 = arith.constant 0 : i32
    %c0_i32_0 = arith.constant 0 : i32
    return %arg0, %c0_i32 : i32, i32
  }
  func.func @transform_1(%arg0: i32, %arg1: i32) -> (i32, i32, i32) {
    %c0_i32 = arith.constant 0 : i32
    %c0_i32_0 = arith.constant 0 : i32
    return %arg1, %arg0, %c0_i32 : i32, i32, i32
  }
}

</mosaic_0001>

<bundles_post_ra>
// kernel: tpu_custom_call.1
= control target key start
LH: loop header
LB: loop body
LE: loop exit
PB: predicated region body
PF: predicated region fallthrough
CT: control target
= control target key end

     0   :  { %6 = vsyncpa [#allocation3], 0  ;;  %s135_s0 = inlined_call_operand.hbm [shape: f32[1,256], index: 0, kind: input, shape index: {}]   ;;  %s136_s1 = inlined_call_operand.hbm [shape: f32[2,1,256], index: 1, kind: output, shape index: {}]  }
   0x1   :  { %7 = vsyncpa [#allocation4], 0  ;;  %s97_s6 = smov [#allocation2]   ;;  %s49_s10 = scalar_lea.hbm %s135_s0, 32 }
   0x2   :  { %s14_s7 = sshll.u32 %s97_s6, 4  ;;  %p50_p0 = scmp.ne.s32.totalorder %s135_s0, %s49_s10  ;;  %s15_s7 = int_to_ptr.vmem [resolvable:$true] %s14_s7 }
   0x3   :  { %p53_p1 = scmp.lt.u32.totalorder %s49_s10, %s135_s0 }
   0x5   :  { %p55_p2 = pnand %p53_p1, %p50_p0 }
   0x7   :  { %58 = shalt.err (!%p55_p2)
}
   0x8   :  { %s59_s15 = scalar_lea.vmem %s15_s7, 32  ;;  %p64_p4 = scmp.lt.s32.totalorder %s15_s7, %s15_s7 }
   0x9   :  { %p60_p3 = scmp.ne.s32.totalorder %s15_s7, %s59_s15  ;;  %p65_p5 = scmp.lt.s32.totalorder %s59_s15, %s59_s15 }
   0xb   :  { %p66_p6 = por %p65_p5, %p64_p4 }
   0xd   :  { %p67_p7 = pnand %p66_p6, %p60_p3 }
   0xf   :  { %70 = shalt.err (!%p67_p7)
}
  0x10   :  { %17 = dma.hbm_to_vmem [thread:$0]  %s135_s0, 32, %s15_s7, [#allocation3]  }
  0x11   :  { %93 = dma.done.wait [#allocation3], 32  }
  0x12   :  { %94 = vsyncadd [#allocation3], 4294967264  ;;  %v22_v0 = vlaneseq  ;;  %s98_s18 = smov [#allocation5]   ;;  %v21_v1 = vld [vmem:[#allocation2] sm:$0x3] }
  0x13   :  { %s33_s19 = sshll.u32 %s98_s18, 4  ;;  %s34_s19 = int_to_ptr.vmem [resolvable:$true] %s33_s19 }
  0x14   :  { %vm24_vm0 = vcmp.lt.s32.totalorder %v22_v0, 256  ;;  %s71_s20 = scalar_lea.vmem %s34_s19, 64  ;;  %p76_p9 = scmp.lt.s32.totalorder %s34_s19, %s34_s19 }
  0x15   :  { %26 = vst.msk [vmem:[#allocation5] sm:$0x3] %vm24_vm0, %v21_v1  ;;  %27 = vst.msk [vmem:[#allocation5 + $0x2] sm:$0x3] %vm24_vm0, %v21_v1  ;;  %p72_p8 = scmp.ne.s32.totalorder %s34_s19, %s71_s20  ;;  %p77_p10 = scmp.lt.s32.totalorder %s71_s20, %s71_s20 }
  0x17   :  { %p78_p11 = por %p77_p10, %p76_p9 }
  0x19   :  { %p79_p12 = pnand %p78_p11, %p72_p8 }
  0x1b   :  { %82 = shalt.err (!%p79_p12)
}
  0x1c   :  { %s83_s0 = scalar_lea.hbm %s136_s1, 64 }
  0x1d   :  { %p84_p13 = scmp.ne.s32.totalorder %s136_s1, %s83_s0  ;;  %p87_p0 = scmp.lt.u32.totalorder %s83_s0, %s136_s1 }
  0x1f   :  { %p89_p1 = pnand %p87_p0, %p84_p13 }
  0x21   :  { %92 = shalt.err (!%p89_p1)
}
  0x22   :  { %s99_s27 = smov 32   ;;  %s100_s28 = smov 2  }
  0x23   :  { %39 = dma.vmem_to_hbm [thread:$0]  %s34_s19, 64, %s136_s1, [#allocation4], %s99_s27, %s99_s27, %s100_s28  }
  0x24   :  { %95 = dma.done.wait [#allocation4], 64  }
  0x25   :  { %96 = vsyncadd [#allocation4], 4294967232 }
  0x26   :  { %43 = vsyncpa [#allocation3], 1 }
  0x27   :  { %44 = vsyncpa [#allocation4], 1 }

</bundles_post_ra>
